<compile_context>
chip_gen: v6e
topology: v6e:2x2x1
jax: 0.10.0
libtpu: 0.0.40
codegen_flags: <defaults>
</compile_context>

<pallas_src>
import functools

import jax
import jax.numpy as jnp
from jax.experimental import pallas as pl
from jax.experimental.pallas import tpu as pltpu


# ---------------------------------------------------------------------------
# In-kernel stencil helpers (roll-based, relayout-free)
# ---------------------------------------------------------------------------
def _cd1(x, axis):
    """Centered first difference along a sublane/lane axis via XLU rolls.

    out[i] = +/- (x[i+1] - x[i-1]); the sign depends on the roll convention but
    the energy only uses squares / abs, and the wrap-around rows/cols land in
    the halo region that the wrapper crops away.
    """
    n = x.shape[axis]
    return pltpu.roll(x, 1, axis) - pltpu.roll(x, n - 1, axis)


def _cd2(x, axis):
    """Centered second difference x[i+2] - 2*x[i] + x[i-2] (direction symmetric)."""
    n = x.shape[axis]
    return pltpu.roll(x, 2, axis) + pltpu.roll(x, n - 2, axis) - 2.0 * x


def _slab_energy(fv, mode, halo):
    """fv: (n_centers + 2*halo, H, W) float32.

    Returns the unscaled per-voxel energy summed over the slab's D-centers,
    shape (H, W).  The H/W halo columns contain roll wrap-around garbage and
    are cropped by the wrapper.  Derivative 0.5 scales are folded out.
    """
    block = fv.shape[0]
    if mode == "bending":
        c = fv[2:block - 2]                                  # centers
        fdd = fv[4:block] - 2.0 * c + fv[:block - 4]         # 4 * d2/dD2
        fhh = _cd2(c, 1)                                     # 4 * d2/dH2
        fww = _cd2(c, 2)                                     # 4 * d2/dW2
        dd = fv[3:block - 1] - fv[1:block - 3]               # 2 * d/dD
        dh = _cd1(c, 1)                                      # 2 * d/dH
        fdh = _cd1(dd, 1)                                    # 4 * d2/dDdH
        fdw = _cd1(dd, 2)                                    # 4 * d2/dDdW
        fhw = _cd1(dh, 2)                                    # 4 * d2/dHdW
        e = (fdd * fdd + fhh * fhh + fww * fww
             + 2.0 * (fdh * fdh + fdw * fdw + fhw * fhw))
    else:
        c = fv[1:block - 1]                                  # centers
        gd = fv[2:block] - fv[:block - 2]                    # 2 * d/dD
        gh = _cd1(c, 1)                                      # 2 * d/dH
        gw = _cd1(c, 2)                                      # 2 * d/dW
        if mode == "gradient-l1":
            e = jnp.abs(gd) + jnp.abs(gh) + jnp.abs(gw)
        else:
            e = gd * gd + gh * gh + gw * gw
    return jnp.sum(e, axis=0)


# ---------------------------------------------------------------------------
# Kernel: one grid step = one equal-size D-chunk of one channel-volume,
# streamed as double-buffered halo'd D-slabs with a statically peeled last slab.
# ---------------------------------------------------------------------------
def _energy_kernel(x_hbm, out_ref, buf, sem, *, mode, halo, tile_d, last_d,
                   n_full, chunk_planes):
    b = pl.program_id(0)
    c = pl.program_id(1)
    chunk_base = c * chunk_planes                    # first output plane here

    block_d = tile_d + 2 * halo
    block_last = last_d + 2 * halo

    def full_copy(t, slot):
        return pltpu.make_async_copy(
            x_hbm.at[b, pl.ds(chunk_base + t * tile_d, block_d)],
            buf.at[slot],
            sem.at[slot])

    def last_copy(slot):
        return pltpu.make_async_copy(
            x_hbm.at[b, pl.ds(chunk_base + n_full * tile_d, block_last)],
            buf.at[slot, pl.ds(0, block_last)],
            sem.at[slot])

    # Prime the DMA pipeline and zero the lane-dense per-step accumulator
    # (= the aligned output block, written back to HBM once per grid step).
    if n_full > 0:
        full_copy(0, 0).start()
    else:
        last_copy(0).start()
    out_ref[0, 0] = jnp.zeros(out_ref.shape[2:], out_ref.dtype)

    if n_full > 0:
        @pl.loop(0, n_full)
        def _(t):
            slot = t & 1

            # Prefetch the next slab (or the peeled last slab) into the other
            # buffer while we compute on the current one.
            @pl.when(t + 1 < n_full)
            def _():
                full_copy(t + 1, 1 - slot).start()

            @pl.when(t + 1 == n_full)
            def _():
                last_copy(1 - slot).start()

            full_copy(t, slot).wait()
            fv = buf[slot].astype(jnp.float32)           # (block_d, H, W)
            out_ref[0, 0] += _slab_energy(fv, mode, halo)

    # Statically peeled last (possibly shorter) slab -> no ragged masking ever.
    last_slot = n_full & 1
    last_copy(last_slot).wait()
    fv = buf[last_slot, pl.ds(0, block_last)].astype(jnp.float32)
    out_ref[0, 0] += _slab_energy(fv, mode, halo)


# ---------------------------------------------------------------------------
# Host-side helpers: generation-aware VMEM budgeting and grid shaping
# ---------------------------------------------------------------------------
def _round_up(x, m):
    return -(-x // m) * m


def _vmem_limit_bytes():
    try:
        cap = int(pltpu.get_tpu_info().vmem_capacity_bytes)   # 128 MiB v5e/v6e, 64 MiB v7x
    except Exception:
        cap = 64 * 1024 * 1024
    return min((cap * 4) // 5, 112 * 1024 * 1024)


def _pick_tile_d(chunk_planes, h_p, w_p, itemsize, mode, vmem_limit):
    halo = 2 if mode == "bending" else 1
    plane_raw = h_p * w_p * itemsize
    plane_f32 = h_p * w_p * 4
    # Live-VMEM model: 2x raw double-buffer slab + k f32 intermediate planes
    # per D-center (f32 cast, stencil fields, energy, roll temporaries).
    k = 14 if mode == "bending" else 7
    fixed = 4 * halo * plane_raw + 2 * halo * plane_f32 + 4 * plane_f32
    margin = 6 << 20                                   # mosaic internal scratch
    per_plane = 2 * plane_raw + k * plane_f32
    tile_d = (vmem_limit - fixed - margin) // per_plane
    return int(max(1, min(tile_d, chunk_planes)))


def _pick_n_chunks(bc, d_int):
    # v7x megacore balance: with few channel-volumes, split each volume into a
    # few *equal* D-chunks so the parallel grid is even and larger, while every
    # chunk still runs identical static code.
    if bc >= 8 and bc % 2 == 0:
        return 1
    for n in (2, 4, 3):
        if d_int % n == 0 and d_int // n >= 4 and (bc * n) % 2 == 0:
            return n
    return 1


# ---------------------------------------------------------------------------
# Public wrapper (semantics of DisplacementRegularizer(energy_type)(disp))
# ---------------------------------------------------------------------------
def displacement_regularizer(disp, energy_type="gradient-l2", *, tile_d=None,
                             n_chunks=None):
    if energy_type not in ("gradient-l2", "gradient-l1", "bending"):
        raise Exception("Not recognised local regulariser!")
    halo = 2 if energy_type == "bending" else 1

    b, ch, d, h, w = disp.shape
    assert ch == 3, "displacement field must have 3 channels"
    bc = b * ch
    x = disp.reshape(bc, d, h, w)

    # Lane density: the energy (and the voxel count) is symmetric in the three
    # spatial axes, so put the widest axis on lanes when W is narrow.
    if w < 128:
        dims = (d, h, w)
        order = tuple(sorted(range(3), key=lambda i: dims[i]))
        if order != (0, 1, 2):
            x = jnp.transpose(x, (0,) + tuple(1 + i for i in order))
    _, d2, h2, w2 = x.shape

    if d2 <= 2 * halo or h2 <= 2 * halo or w2 <= 2 * halo:
        raise ValueError("volume too small for this regularizer")

    # Pad sublanes/lanes to (8,128): slab DMAs and every vector op become
    # unmasked full vregs; pad rows/cols land outside the crop below.
    h_p = _round_up(h2, 8)
    w_p = _round_up(w2, 128)
    if (h_p, w_p) != (h2, w2):
        x = jnp.pad(x, ((0, 0), (0, 0), (0, h_p - h2), (0, w_p - w2)))

    d_int = d2 - 2 * halo
    if n_chunks is None:
        n_chunks = _pick_n_chunks(bc, d_int)
    if d_int % n_chunks != 0:
        n_chunks = 1
    chunk_planes = d_int // n_chunks

    vmem_limit = _vmem_limit_bytes()
    if tile_d is None:
        tile_d = _pick_tile_d(chunk_planes, h_p, w_p,
                              jnp.dtype(x.dtype).itemsize, energy_type,
                              vmem_limit)
    tile_d = int(min(max(1, int(tile_d)), chunk_planes))
    n_full = (chunk_planes - 1) // tile_d            # full slabs; last is peeled
    last_d = chunk_planes - n_full * tile_d
    block_d = tile_d + 2 * halo

    kernel = functools.partial(
        _energy_kernel, mode=energy_type, halo=halo, tile_d=tile_d,
        last_d=last_d, n_full=n_full, chunk_planes=chunk_planes)

    parts = pl.pallas_call(
        kernel,
        out_shape=jax.ShapeDtypeStruct((bc, n_chunks, h_p, w_p), jnp.float32),
        grid=(bc, n_chunks),
        in_specs=[pl.BlockSpec(memory_space=pl.ANY)],        # raw HBM ref
        out_specs=pl.BlockSpec((1, 1, h_p, w_p), lambda i, j: (i, j, 0, 0)),
        scratch_shapes=[
            pltpu.VMEM((2, block_d, h_p, w_p), x.dtype),     # slab double buffer
            pltpu.SemaphoreType.DMA((2,)),
        ],
        compiler_params=pltpu.CompilerParams(
            dimension_semantics=("parallel", "parallel"),
            vmem_limit_bytes=int(vmem_limit)),
    )(x)

    # Crop the H/W halo (also removes roll wrap-around garbage and alignment
    # padding), finish the reduction and apply the folded-out constants.
    valid = parts[:, :, halo:h2 - halo, halo:w2 - halo]
    total = jnp.sum(valid, dtype=jnp.float32)
    count = bc * d_int * (h2 - 2 * halo) * (w2 - 2 * halo)
    if energy_type == "bending":
        return total / (16.0 * count)                 # (0.25)^2 per 2nd derivative
    scale = 0.25 if energy_type == "gradient-l2" else 0.5
    return (scale * total / count) / 3.0


# ---------------------------------------------------------------------------
# Pure-JAX reference (mirrors the PyTorch module) for verification
# ---------------------------------------------------------------------------
def _ref_energy(disp, energy_type="gradient-l2"):
    def gdx(fv):
        return (fv[:, 2:, 1:-1, 1:-1] - fv[:, :-2, 1:-1, 1:-1]) / 2
    def gdy(fv):
        return (fv[:, 1:-1, 2:, 1:-1] - fv[:, 1:-1, :-2, 1:-1]) / 2
    def gdz(fv):
        return (fv[:, 1:-1, 1:-1, 2:] - fv[:, 1:-1, 1:-1, :-2]) / 2
    def gtxyz(t, fn):
        return jnp.stack([fn(t[:, i]) for i in (0, 1, 2)], axis=1)

    dTdx = gtxyz(disp, gdx)
    dTdy = gtxyz(disp, gdy)
    dTdz = gtxyz(disp, gdz)
    if energy_type == "gradient-l2":
        return jnp.mean(dTdx ** 2 + dTdy ** 2 + dTdz ** 2) / 3.0
    if energy_type == "gradient-l1":
        return jnp.mean(jnp.abs(dTdx) + jnp.abs(dTdy) + jnp.abs(dTdz)) / 3.0
    dxx = gtxyz(dTdx, gdx)
    dyy = gtxyz(dTdy, gdy)
    dzz = gtxyz(dTdz, gdz)
    dxy = gtxyz(dTdx, gdy)
    dyz = gtxyz(dTdy, gdz)
    dxz = gtxyz(dTdx, gdz)
    return jnp.mean(dxx ** 2 + dyy ** 2 + dzz ** 2
                    + 2 * dxy ** 2 + 2 * dxz ** 2 + 2 * dyz ** 2)


if __name__ == "__main__":
    k0, k1, k2 = jax.random.split(jax.random.PRNGKey(0), 3)
    # Case A: cubic field (B=2, C=3, 16^3) -> pad path, 2 D-chunks, single slab.
    disp_a = jax.random.normal(k0, (2, 3, 16, 16, 16), dtype=jnp.float32)
    # Case B: anisotropic field -> spatial permutation + pad, and with tile_d=2
    # the multi-slab double-buffer + peeled-last-slab path.
    disp_b = jax.random.normal(k1, (1, 3, 20, 16, 12), dtype=jnp.float32)
    # Case C: bf16 input (kernel upcasts on the VPU).
    disp_c = jax.random.normal(k2, (1, 3, 16, 16, 16),
                               dtype=jnp.float32).astype(jnp.bfloat16)

    ok = True
    for etype in ("gradient-l2", "gradient-l1", "bending"):
        for disp, td in ((disp_a, None), (disp_b, 2)):
            out = jax.block_until_ready(
                displacement_regularizer(disp, etype, tile_d=td))
            ref = _ref_energy(disp, etype)
            if not bool(jnp.allclose(out, ref, rtol=1e-4, atol=1e-6)):
                ok = False
                print(f"MISMATCH {etype} shape={disp.shape} tile_d={td}: "
                      f"kernel={out} ref={ref}")

    out = jax.block_until_ready(
        displacement_regularizer(disp_c, "gradient-l2"))
    ref = _ref_energy(disp_c.astype(jnp.float32), "gradient-l2")
    if not bool(jnp.allclose(out, ref, rtol=2e-3, atol=1e-6)):
        ok = False
        print(f"MISMATCH bf16 gradient-l2: kernel={out} ref={ref}")

    if ok:
        print("KERNEL_OK")
</pallas_src>

<mosaic_0001>
module attributes {stable_mosaic.version = 11 : i64} {
  func.func @_energy_kernel(%arg0: i32, %arg1: i32, %arg2: memref<6x16x16x128xf32, #tpu.memory_space<any>>, %arg3: memref<1x1x16x128xf32, #tpu.memory_space<vmem>>, %arg4: memref<2x9x16x128xf32, #tpu.memory_space<vmem>>, %arg5: memref<2x!tpu.dma_semaphore, #tpu.memory_space<semaphore_mem>>) attributes {dimension_semantics = [#tpu.dimension_semantics<parallel>, #tpu.dimension_semantics<parallel>], iteration_bounds = array<i64: 6, 2>, scalar_prefetch = 0 : i64, scratch_operands = 2 : i64, tpu.core_type = #tpu.core_type<tc>, window_params = [{}, {transform_indices = @transform_1, window_bounds = array<i64: 1, 1, 16, 128>}]} {
    %c7_i32 = arith.constant 7 : i32
    %0 = arith.muli %arg1, %c7_i32 : i32
    %c0_i32 = arith.constant 0 : i32
    %1 = arith.addi %0, %c0_i32 : i32
    %c0_i32_0 = arith.constant 0 : i32
    %c0_i32_1 = arith.constant 0 : i32
    %c0_i32_2 = arith.constant 0 : i32
    %c0_i32_3 = arith.constant 0 : i32
    %2 = tpu.memref_slice %arg2[%arg0, %1, %c0_i32_2, %c0_i32_3] : memref<6x16x16x128xf32, #tpu.memory_space<any>> -> memref<1x9x16x128xf32, #tpu.memory_space<any>>
    %3 = tpu.memref_squeeze %2 : memref<1x9x16x128xf32, #tpu.memory_space<any>> -> memref<9x16x128xf32, #tpu.memory_space<any>>
    %c0_i32_4 = arith.constant 0 : i32
    %c0_i32_5 = arith.constant 0 : i32
    %c0_i32_6 = arith.constant 0 : i32
    %4 = tpu.memref_slice %arg4[%c0_i32_0, %c0_i32_4, %c0_i32_5, %c0_i32_6] : memref<2x9x16x128xf32, #tpu.memory_space<vmem>> -> memref<1x9x16x128xf32, #tpu.memory_space<vmem>>
    %5 = tpu.memref_squeeze %4 : memref<1x9x16x128xf32, #tpu.memory_space<vmem>> -> memref<9x16x128xf32, #tpu.memory_space<vmem>>
    %6 = tpu.memref_slice %arg5[%c0_i32_1] : memref<2x!tpu.dma_semaphore, #tpu.memory_space<semaphore_mem>> -> memref<1x!tpu.dma_semaphore, #tpu.memory_space<semaphore_mem>>
    %7 = tpu.memref_squeeze %6 : memref<1x!tpu.dma_semaphore, #tpu.memory_space<semaphore_mem>> -> memref<!tpu.dma_semaphore, #tpu.memory_space<semaphore_mem>>
    tpu.enqueue_dma source(%3 : memref<9x16x128xf32, #tpu.memory_space<any>>) target(%5 : memref<9x16x128xf32, #tpu.memory_space<vmem>>) target_semaphore(%7 : memref<!tpu.dma_semaphore, #tpu.memory_space<semaphore_mem>>)
    %cst = arith.constant 0.000000e+00 : f32
    %8 = vector.broadcast %cst : f32 to vector<16x128xf32>
    %c0 = arith.constant 0 : index
    %c0_7 = arith.constant 0 : index
    %c0_8 = arith.constant 0 : index
    %c0_9 = arith.constant 0 : index
    %9 = vector.load %arg3[%c0, %c0_7, %c0_8, %c0_9] : memref<1x1x16x128xf32, #tpu.memory_space<vmem>>, vector<1x1x16x128xf32>
    %10 = vector.shape_cast %9 : vector<1x1x16x128xf32> to vector<16x128xf32>
    %11 = vector.shape_cast %8 : vector<16x128xf32> to vector<1x1x16x128xf32>
    tpu.vector_store %arg3[%c0, %c0_7, %c0_8, %c0_9], %11 {strides = array<i32>} : memref<1x1x16x128xf32, #tpu.memory_space<vmem>>, vector<1x1x16x128xf32>,
    %c0_i32_10 = arith.constant 0 : i32
    %12 = arith.addi %0, %c0_i32_10 : i32
    %c0_i32_11 = arith.constant 0 : i32
    %c0_i32_12 = arith.constant 0 : i32
    %c0_i32_13 = arith.constant 0 : i32
    %c0_i32_14 = arith.constant 0 : i32
    %13 = tpu.memref_slice %arg2[%arg0, %12, %c0_i32_13, %c0_i32_14] : memref<6x16x16x128xf32, #tpu.memory_space<any>> -> memref<1x9x16x128xf32, #tpu.memory_space<any>>
    %14 = tpu.memref_squeeze %13 : memref<1x9x16x128xf32, #tpu.memory_space<any>> -> memref<9x16x128xf32, #tpu.memory_space<any>>
    %c0_i32_15 = arith.constant 0 : i32
    %c0_i32_16 = arith.constant 0 : i32
    %c0_i32_17 = arith.constant 0 : i32
    %15 = tpu.memref_slice %arg4[%c0_i32_11, %c0_i32_15, %c0_i32_16, %c0_i32_17] : memref<2x9x16x128xf32, #tpu.memory_space<vmem>> -> memref<1x9x16x128xf32, #tpu.memory_space<vmem>>
    %16 = tpu.memref_squeeze %15 : memref<1x9x16x128xf32, #tpu.memory_space<vmem>> -> memref<9x16x128xf32, #tpu.memory_space<vmem>>
    %17 = tpu.memref_slice %arg5[%c0_i32_12] : memref<2x!tpu.dma_semaphore, #tpu.memory_space<semaphore_mem>> -> memref<1x!tpu.dma_semaphore, #tpu.memory_space<semaphore_mem>>
    %18 = tpu.memref_squeeze %17 : memref<1x!tpu.dma_semaphore, #tpu.memory_space<semaphore_mem>> -> memref<!tpu.dma_semaphore, #tpu.memory_space<semaphore_mem>>
    tpu.wait_dma2 semaphore(%18 : memref<!tpu.dma_semaphore, #tpu.memory_space<semaphore_mem>>) src(%14 : memref<9x16x128xf32, #tpu.memory_space<any>>) dst(%16 : memref<9x16x128xf32, #tpu.memory_space<vmem>>)
    %c0_18 = arith.constant 0 : index
    %c0_19 = arith.constant 0 : index
    %c0_20 = arith.constant 0 : index
    %c0_21 = arith.constant 0 : index
    %19 = vector.load %arg4[%c0_18, %c0_19, %c0_20, %c0_21] : memref<2x9x16x128xf32, #tpu.memory_space<vmem>>, vector<1x9x16x128xf32>
    %20 = vector.shape_cast %19 : vector<1x9x16x128xf32> to vector<9x16x128xf32>
    %c0_22 = arith.constant 0 : index
    %c0_23 = arith.constant 0 : index
    %c0_24 = arith.constant 0 : index
    %c0_25 = arith.constant 0 : index
    %21 = vector.load %arg3[%c0_22, %c0_23, %c0_24, %c0_25] : memref<1x1x16x128xf32, #tpu.memory_space<vmem>>, vector<1x1x16x128xf32>
    %22 = vector.shape_cast %21 : vector<1x1x16x128xf32> to vector<16x128xf32>
    %23 = vector.extract_strided_slice %20 {offsets = [1, 0, 0], sizes = [7, 16, 128], strides = [1, 1, 1]} : vector<9x16x128xf32> to vector<7x16x128xf32>
    %24 = vector.extract_strided_slice %20 {offsets = [2, 0, 0], sizes = [7, 16, 128], strides = [1, 1, 1]} : vector<9x16x128xf32> to vector<7x16x128xf32>
    %25 = vector.extract_strided_slice %20 {offsets = [0, 0, 0], sizes = [7, 16, 128], strides = [1, 1, 1]} : vector<9x16x128xf32> to vector<7x16x128xf32>
    %26 = arith.subf %24, %25 : vector<7x16x128xf32>
    %c1_i32 = arith.constant 1 : i32
    %27 = tpu.dynamic_rotate %23 by %c1_i32 dim 1 : vector<7x16x128xf32>, i32 -> vector<7x16x128xf32>
    %c15_i32 = arith.constant 15 : i32
    %28 = tpu.dynamic_rotate %23 by %c15_i32 dim 1 : vector<7x16x128xf32>, i32 -> vector<7x16x128xf32>
    %29 = arith.subf %27, %28 : vector<7x16x128xf32>
    %c1_i32_26 = arith.constant 1 : i32
    %30 = tpu.dynamic_rotate %23 by %c1_i32_26 dim 2 : vector<7x16x128xf32>, i32 -> vector<7x16x128xf32>
    %c127_i32 = arith.constant 127 : i32
    %31 = tpu.dynamic_rotate %23 by %c127_i32 dim 2 : vector<7x16x128xf32>, i32 -> vector<7x16x128xf32>
    %32 = arith.subf %30, %31 : vector<7x16x128xf32>
    %33 = arith.mulf %26, %26 : vector<7x16x128xf32>
    %34 = arith.mulf %29, %29 : vector<7x16x128xf32>
    %35 = arith.addf %33, %34 : vector<7x16x128xf32>
    %36 = arith.mulf %32, %32 : vector<7x16x128xf32>
    %37 = arith.addf %35, %36 : vector<7x16x128xf32>
    %cst_27 = arith.constant dense<0.000000e+00> : vector<16x128xf32>
    %38 = vector.multi_reduction <add>, %37, %cst_27 [0] : vector<7x16x128xf32> to vector<16x128xf32>
    %39 = arith.addf %22, %38 : vector<16x128xf32>
    %c0_28 = arith.constant 0 : index
    %c0_29 = arith.constant 0 : index
    %c0_30 = arith.constant 0 : index
    %c0_31 = arith.constant 0 : index
    %40 = vector.load %arg3[%c0_28, %c0_29, %c0_30, %c0_31] : memref<1x1x16x128xf32, #tpu.memory_space<vmem>>, vector<1x1x16x128xf32>
    %41 = vector.shape_cast %40 : vector<1x1x16x128xf32> to vector<16x128xf32>
    %42 = vector.shape_cast %39 : vector<16x128xf32> to vector<1x1x16x128xf32>
    tpu.vector_store %arg3[%c0_28, %c0_29, %c0_30, %c0_31], %42 {strides = array<i32>} : memref<1x1x16x128xf32, #tpu.memory_space<vmem>>, vector<1x1x16x128xf32>,
    return
  }
  func.func @transform_1(%arg0: i32, %arg1: i32) -> (i32, i32, i32, i32) {
    %c0_i32 = arith.constant 0 : i32
    %c0_i32_0 = arith.constant 0 : i32
    %c0_i32_1 = arith.constant 0 : i32
    return %arg0, %arg1, %c0_i32, %c0_i32_0 : i32, i32, i32, i32
  }
}

</mosaic_0001>

<bundles_post_ra>
// kernel: tpu_custom_call.1
= control target key start
LH: loop header
LB: loop body
LE: loop exit
PB: predicated region body
PF: predicated region fallthrough
CT: control target
= control target key end

     0   :  { %6 = vsyncpa [#allocation5], 0  ;;  %s916_s0 = inlined_call_operand.hbm [shape: f32[6,16,16,128], index: 0, kind: input, shape index: {}]   ;;  %s917_s1 = inlined_call_operand.hbm [shape: f32[6,2,16,128], index: 1, kind: output, shape index: {}]  }
   0x1   :  { %8 = vsyncpa [#allocation5 + $0x1], 0  ;;  %s614_s6 = smov 0   ;;  %s616_s7 = smov 0  }
   0x2   :  { %s618_s8 = smov 0   ;;  %s620_s9 = smov 0  }
   0x3   :  { %s622_s10 = smov 0  }
   0x4 LB: > { %s20_s11 = sadd.s32 1, %s587_s8  ;;  %s23_s12 = sadd.s32 1, %s591_s9  ;;  %s595_s10 = sphi %s622_s10, %s14_s10   ;;  %s591_s9 = sphi %s620_s9, %s923_s9   ;;  %s587_s8 = sphi %s618_s8, %s922_s8   ;;  %s583_s7 = sphi %s616_s7, %s921_s7   ;;  %s579_s6 = sphi %s614_s6, %s920_s6  }
   0x5   : > { %p21_p0 = scmp.ge.s32.totalorder %s20_s11, 2  ;;  %s435_s13 = sadd.s32 4294967295, %s595_s10  }
   0x6   : > { %p41_p1 = scmp.ne.s32.totalorder %s583_s7, %s579_s6  ;;  %p42_p3 = scmp.eq.s32.totalorder %s435_s13, 11 }
   0x7   : > { %s925_s11 = smov (%p21_p0, %s20_s11), 0  ;;  %s927_s12 = smov (!%p21_p0, %s23_s12), %s591_s9 }
   0x8   : > { %p25_p2 = scmp.ge.s32.totalorder %s927_s12, 6  ;;  %s28_s14 = ssub.s32 %s587_s8, %s925_s11 }
   0x9   : > { %p651_p4 = por %p42_p3, %p41_p1  ;;  %s32_s17 = sadd.s32 1, %s583_s7 }
   0xa   : > { %s929_s12 = smov (%p25_p2, %s927_s12), 0  ;;  %p36_p5 = scmp.eq.s32.totalorder %s595_s10, 11 }
   0xb   : > { %s27_s16 = ssub.s32 %s591_s9, %s929_s12  ;;  %p437_p9 = scmp.ge.s32.totalorder %s595_s10, 12 }
   0xc   : > { %s29_s18 = sor.u32 %s28_s14, %s27_s16  ;;  %s439_s21 = smul.u32 (!%p437_p9), 112, %s587_s8 }
   0xd   : > { %p30_p6 = scmp.eq.s32.totalorder %s29_s18, 0  ;;  %p436_p7 = scmp.ne.s32.totalorder %s29_s18, 0 }
   0xe   : > { %51 = sbr.rel (%p437_p9) target bundleno = 216 (0xd8), region = 12  ;;  %s440_s22 = sshll.u32 (!%p437_p9), %s591_s9, 8 }
   0xf   : > { %s660_s19 = scalar_select %p30_p6, %s583_s7, %s32_s17  }
  0x10   : > { %p662_p8 = por %p436_p7, %p36_p5  ;;  %s56_s23 = sand.u32 (!%p437_p9), 1, %s583_s7  }
  0x11   : > { %s62_s24 = sadd.s32 (!%p437_p9), %s440_s22, %s439_s21  ;;  %s597_s25 = smov (!%p437_p9), [#allocation2]  }
  0x12   : > { %s72_s26 = sshll.u32 (!%p437_p9), %s597_s25, 4  ;;  %s441_s27 = sshll.u32 (!%p437_p9), %s62_s24, 4  ;;  %s73_s26 = int_to_ptr.vmem [resolvable:$true] %s72_s26 }
  0x13   : > { %s64_s30 = scalar_lea.hbm %s916_s0, %s441_s27  ;;  %s438_s2 = sshll.u32 %s56_s23, 4 }
  0x14   : > { %s513_s3 = scalar_lea.vmem %s73_s26, 2304  ;;  %s517_s4 = scalar_lea.vmem %s73_s26, 4608 }
  0x15   : > { %p514_p10 = scmp.ne.s32.totalorder %s73_s26, %s513_s3  ;;  %p518_p11 = scmp.lt.s32.totalorder %s73_s26, %s73_s26 }
  0x16   : > { %p519_p12 = scmp.lt.s32.totalorder %s517_s4, %s513_s3 }
  0x18   : > { %p520_p13 = por %p519_p12, %p518_p11 }
  0x1a   : > { %p521_p0 = pnand %p520_p13, %p514_p10 }
  0x1c   : > { %524 = shalt.err (!%p521_p0)  }
  0x1d   : > { %75 = dma.hbm_to_vmem [thread:$0]  %s64_s30, 2304, %s73_s26, [#allocation3]  ;;  %v598_v0 = vmov 0.0  }
  0x1e   : > { %s675_s5 = scalar_lea.vmem [#allocation4], %s438_s2 }
  0x1f   : > { %76 = vst [vmem:[%s675_s5] sm:$0xff] %v598_v0  ;;  %77 = vst [vmem:[%s675_s5 + $0x8] sm:$0xff] %v598_v0 }
  0x20   : > { %571 = dma.done.wait [#allocation3], 2304 }
  0x21   : > { %572 = vsyncadd [#allocation3], 4294964992  ;;  %v130_v1 = vlaneseq  ;;  %v681_v3 = vld [vmem:[#allocation2 + $0x20] sm:$0xff]  ;;  %v84_v4 = vld [vmem:[#allocation2 + $0x10] sm:$0xff]  ;;  %s599_s13 = smov 1   ;;  %s600_s14 = smov 127  }
  0x22   : > { %194 = vrot.lane.b32.xlu1 %v681_v3, %s599_s13  ;;  %190 = vrot.lane.b32.xlu0 %v84_v4, %s599_s13  ;;  %v116_v5 = vrot.slane %v84_v4, 7  ;;  %v147_v6 = vrot.slane %v84_v4, 1  ;;  %v85_v7 = vld [vmem:[#allocation2 + $0x18] sm:$0xff]  ;;  %v87_v9 = vld [vmem:[#allocation2 + $0x28] sm:$0xff]  ;;  %v690_v12 = vld [vmem:[#allocation2 + $0x30] sm:$0xff]  ;;  %v117_v13 = vrot.slane %v681_v3, 7 }
  0x23   : > { %v679_v2 = vshrl.u32 %v130_v1, 7  ;;  %v686_v8 = vld [vmem:[#allocation2 + $0x38] sm:$0xff]  ;;  %v123_v10 = vrot.slane %v85_v7, 7  ;;  %v154_v11 = vrot.slane %v85_v7, 1  ;;  %v124_v15 = vrot.slane %v87_v9, 7  ;;  %v83_v19 = vld [vmem:[#allocation2 + $0x8] sm:$0xff] }
  0x24   : > { %v105_v14 = vsub.f32 %v686_v8, %v85_v7  ;;  %v148_v16 = vrot.slane %v681_v3, 1  ;;  %v155_v17 = vrot.slane %v87_v9, 1  ;;  %v104_v18 = vsub.f32 %v690_v12, %v84_v4  ;;  %v82_v24 = vld [vmem:[#allocation2] sm:$0xff]  ;;  %v716_v38 = vld [vmem:[#allocation2 + $0x48] sm:$0xff]  ;;  %v746_v60 = vld [vmem:[#allocation2 + $0x58] sm:$0xff]  ;;  %s443_s16 = sshll.u32 %s587_s8, 1 }
  0x25   : > { %vm132_vm0 = vcmp.lt.s32.totalorder %v679_v2, 1  ;;  %vm161_vm1 = vcmp.lt.s32.totalorder %v679_v2, 7  ;;  %v118_v25 = vrot.slane %v690_v12, 7  ;;  %v103_v26 = vsub.f32 %v87_v9, %v83_v19  ;;  %v726_v47 = vld [vmem:[#allocation2 + $0x40] sm:$0xff]  ;;  %v750_v1 = vld [vmem:[#allocation2 + $0x50] sm:$0xff]  ;;  %s444_s17 = sshll.u32 %s591_s9, 2 }
  0x26   : > { %v133_v20 = vsel %vm132_vm0, %v116_v5, %v123_v10  ;;  %v169_v21 = vsel %vm161_vm1, %v154_v11, %v147_v6  ;;  %v140_v22 = vsel %vm132_vm0, %v123_v10, %v116_v5  ;;  %v162_v23 = vsel %vm161_vm1, %v147_v6, %v154_v11  ;;  %196 = vrot.lane.b32.xlu1 %v87_v9, %s599_s13  ;;  %s359_s18 = sadd.s32 %s444_s17, %s443_s16  ;;  %s362_s22 = sshll.u32 %s675_s5, 4  ;;  %s363_s22 = int_to_ptr.vmem [resolvable:$true] %s362_s22 }
  0x27   : > { %192 = vrot.lane.b32.xlu0 %v85_v7, %s599_s13  ;;  %v177_v27 = vsub.f32 %v133_v20, %v169_v21  ;;  %v102_v28 = vsub.f32 %v681_v3, %v82_v24  ;;  %v176_v29 = vsub.f32 %v140_v22, %v162_v23  ;;  %v134_v30 = vsel %vm132_vm0, %v117_v13, %v124_v15  ;;  %s445_s21 = sshll.u32 %s359_s18, 7  ;;  %s347_s25 = scalar_lea.sflag [#allocation5], %s56_s23 }
  0x28   : > { %v170_v31 = vsel %vm161_vm1, %v155_v17, %v148_v16  ;;  %v263_v32 = vmul.f32 %v105_v14, %v105_v14  ;;  %v141_v33 = vsel %vm132_vm0, %v124_v15, %v117_v13  ;;  %v261_v34 = vmul.f32 %v103_v26, %v103_v26  ;;  %s361_s24 = scalar_lea.hbm %s917_s1, %s445_s21  ;;  %s525_s26 = scalar_lea.vmem %s363_s22, 256 }
  0x29   : > { %v275_v35 = vmul.f32 %v177_v27, %v177_v27  ;;  %v260_v36 = vmul.f32 %v102_v28, %v102_v28  ;;  %v274_v37 = vmul.f32 %v176_v29, %v176_v29  ;;  %v179_v39 = vsub.f32 %v134_v30, %v170_v31  ;;  %v783_v27 = vld [vmem:[#allocation2 + $0x68] sm:$0xff]  ;;  %v789_v30 = vld [vmem:[#allocation2 + $0x60] sm:$0xff]  ;;  %p526_p1 = scmp.ne.s32.totalorder %s363_s22, %s525_s26  ;;  %s601_s27 = smov [#allocation4]  }
  0x2a   : > { %220 = vrot.lane.b32.xlu1 %v85_v7, %s600_s14  ;;  %v163_v40 = vsel %vm161_vm1, %v148_v16, %v155_v17  ;;  %v262_v41 = vmul.f32 %v104_v18, %v104_v18  ;;  %v125_v42 = vrot.slane %v686_v8, 7  ;;  %v107_v46 = vsub.f32 %v716_v38, %v87_v9  ;;  %s529_s28 = sshll.u32 %s601_s27, 4  ;;  %s530_s28 = int_to_ptr.vmem [resolvable:$false] %s529_s28 }
  0x2b   : > { %218 = vrot.lane.b32.xlu0 %v84_v4, %s600_s14  ;;  %v721_v43 = vadd.f32 %v275_v35, %v261_v34  ;;  %v723_v44 = vadd.f32 %v274_v37, %v260_v36  ;;  %v178_v45 = vsub.f32 %v141_v33, %v163_v40  ;;  %v277_v48 = vmul.f32 %v179_v39, %v179_v39  ;;  %p527_p2 = pnand %p526_p1, %p662_p8  ;;  %s531_s29 = scalar_lea.vmem %s530_s28, 512 }
  0x2c   : > { %v135_v49 = vsel %vm132_vm0, %v118_v25, %v125_v42  ;;  %v149_v50 = vrot.slane %v690_v12, 1  ;;  %v156_v51 = vrot.slane %v686_v8, 1  ;;  %v265_v53 = vmul.f32 %v107_v46, %v107_v46  ;;  %p532_p5 = scmp.lt.s32.totalorder %s363_s22, %s530_s28  ;;  %p533_p6 = scmp.lt.s32.totalorder %s531_s29, %s525_s26 }
  0x2d   : > { %v276_v52 = vmul.f32 %v178_v45, %v178_v45  ;;  %v106_v54 = vsub.f32 %v726_v47, %v681_v3  ;;  %v142_v55 = vsel %vm132_vm0, %v125_v42, %v118_v25  ;;  %v739_v56 = vadd.f32 %v277_v48, %v263_v32  ;;  %p528_p3 = pneg %p527_p2 }
  0x2e   : > { %224 = vrot.lane.b32.xlu1 %v87_v9, %s600_s14  ;;  %v171_v57 = vsel %vm161_vm1, %v156_v51, %v149_v50  ;;  %v164_v58 = vsel %vm161_vm1, %v149_v50, %v156_v51  ;;  %v119_v59 = vrot.slane %v726_v47, 7  ;;  %v126_v4 = vrot.slane %v716_v38, 7  ;;  %p534_p7 = por %p533_p6, %p532_p5 }
  0x2f   : > { %222 = vrot.lane.b32.xlu0 %v681_v3, %s600_s14  ;;  %v748_v61 = vadd.f32 %v276_v52, %v262_v41  ;;  %v181_v62 = vsub.f32 %v135_v49, %v171_v57  ;;  %v180_v63 = vsub.f32 %v142_v55, %v164_v58  ;;  %v264_v0 = vmul.f32 %v106_v54, %v106_v54  ;;  %v97_v52 = vld [vmem:[#allocation2 + $0x78] sm:$0xff] }
  0x30   : > { %v109_v3 = vsub.f32 %v746_v60, %v686_v8  ;;  %v150_v5 = vrot.slane %v726_v47, 1  ;;  %v157_v6 = vrot.slane %v716_v38, 1  ;;  %v108_v10 = vsub.f32 %v750_v1, %v690_v12  ;;  %p535_p9 = pnand %p534_p7, %p528_p3 }
  0x31   : > { %v279_v7 = vmul.f32 %v181_v62, %v181_v62  ;;  %v278_v9 = vmul.f32 %v180_v63, %v180_v63  ;;  %v136_v11 = vsel %vm132_vm0, %v119_v59, %v126_v4  ;;  %v143_v18 = vsel %vm132_vm0, %v126_v4, %v119_v59 }
  0x32   : > { %200 = vrot.lane.b32.xlu1 %v686_v8, %s599_s13  ;;  %v172_v13 = vsel %vm161_vm1, %v157_v6, %v150_v5  ;;  %v267_v14 = vmul.f32 %v109_v3, %v109_v3  ;;  %v165_v19 = vsel %vm161_vm1, %v150_v5, %v157_v6  ;;  %v266_v20 = vmul.f32 %v108_v10, %v108_v10 }
  0x33   : > { %198 = vrot.lane.b32.xlu0 %v690_v12, %s599_s13  ;;  %v767_v15 = vadd.f32 %v279_v7, %v265_v53  ;;  %v769_v16 = vadd.f32 %v278_v9, %v264_v0  ;;  %v183_v17 = vsub.f32 %v136_v11, %v172_v13  ;;  %v120_v21 = vrot.slane %v750_v1, 7  ;;  %v96_v53 = vld [vmem:[#allocation2 + $0x70] sm:$0xff]  ;;  %v99_v13 = vld [vmem:[#allocation2 + $0x88] sm:$0xff] }
  0x34   : > { %v127_v22 = vrot.slane %v746_v60, 7  ;;  %v182_v24 = vsub.f32 %v143_v18, %v165_v19  ;;  %v151_v25 = vrot.slane %v750_v1, 1  ;;  %v158_v26 = vrot.slane %v746_v60, 1  ;;  %v98_v18 = vld [vmem:[#allocation2 + $0x80] sm:$0xff] }
  0x35   : > { %v281_v23 = vmul.f32 %v183_v17, %v183_v17  ;;  %v111_v33 = vsub.f32 %v783_v27, %v716_v38  ;;  %v110_v34 = vsub.f32 %v789_v30, %v726_v47  ;;  %v121_v46 = vrot.slane %v789_v30, 7 }
  0x36   : > { %228 = vrot.lane.b32.xlu1 %v686_v8, %s600_s14  ;;  %v137_v28 = vsel %vm132_vm0, %v120_v21, %v127_v22  ;;  %v144_v29 = vsel %vm132_vm0, %v127_v22, %v120_v21  ;;  %v280_v32 = vmul.f32 %v182_v24, %v182_v24  ;;  %v173_v8 = vsel %vm161_vm1, %v158_v26, %v151_v25 }
  0x37   : > { %226 = vrot.lane.b32.xlu0 %v690_v12, %s600_s14  ;;  %v791_v31 = vadd.f32 %v281_v23, %v267_v14  ;;  %v185_v12 = vsub.f32 %v137_v28, %v173_v8  ;;  %v166_v35 = vsel %vm161_vm1, %v151_v25, %v158_v26  ;;  %v269_v37 = vmul.f32 %v111_v33, %v111_v33 }
  0x38   : > { %v801_v36 = vadd.f32 %v280_v32, %v266_v20  ;;  %v184_v39 = vsub.f32 %v144_v29, %v166_v35  ;;  %v268_v41 = vmul.f32 %v110_v34, %v110_v34  ;;  %v128_v48 = vrot.slane %v783_v27, 7 }
  0x39   : > { %v283_v40 = vmul.f32 %v185_v12, %v185_v12  ;;  %v152_v49 = vrot.slane %v789_v30, 1  ;;  %v159_v51 = vrot.slane %v783_v27, 1  ;;  %v113_v57 = vsub.f32 %v97_v52, %v746_v60 }
  0x3a   : > { %204 = vrot.lane.b32.xlu1 %v716_v38, %s599_s13  ;;  %v282_v42 = vmul.f32 %v184_v39, %v184_v39  ;;  %v138_v54 = vsel %vm132_vm0, %v121_v46, %v128_v48  ;;  %v145_v55 = vsel %vm132_vm0, %v128_v48, %v121_v46  ;;  %v112_v59 = vsub.f32 %v96_v53, %v750_v1 }
  0x3b   : > { %202 = vrot.lane.b32.xlu0 %v726_v47, %s599_s13  ;;  %v807_v45 = vadd.f32 %v283_v40, %v269_v37  ;;  %v174_v58 = vsel %vm161_vm1, %v159_v51, %v152_v49  ;;  %v129_v63 = vrot.slane %v97_v52, 7  ;;  %v160_v0 = vrot.slane %v97_v52, 1 }
  0x3c   : > { %v812_v50 = vadd.f32 %v282_v42, %v268_v41  ;;  %v187_v62 = vsub.f32 %v138_v54, %v174_v58  ;;  %v271_v3 = vmul.f32 %v113_v57, %v113_v57  ;;  %v270_v4 = vmul.f32 %v112_v59, %v112_v59 }
  0x3d   : > { %v122_v5 = vrot.slane %v96_v53, 7  ;;  %v153_v6 = vrot.slane %v96_v53, 1  ;;  %v115_v20 = vsub.f32 %v99_v13, %v783_v27  ;;  %v114_v22 = vsub.f32 %v98_v18, %v789_v30 }
  0x3e   : > { %232 = vrot.lane.b32.xlu1 %v716_v38, %s600_s14  ;;  %v167_v38 = vsel %vm161_vm1, %v152_v49, %v159_v51  ;;  %v285_v7 = vmul.f32 %v187_v62, %v187_v62 }
  0x3f   : > { %230 = vrot.lane.b32.xlu0 %v726_v47, %s600_s14  ;;  %v186_v47 = vsub.f32 %v145_v55, %v167_v38  ;;  %v139_v14 = vsel %vm132_vm0, %v122_v5, %v129_v63  ;;  %v175_v17 = vsel %vm161_vm1, %v160_v0, %v153_v6  ;;  %v146_v19 = vsel %vm132_vm0, %v129_v63, %v122_v5 }
  0x40   : > { %v833_v10 = vadd.f32 %v285_v7, %v271_v3  ;;  %v189_v21 = vsub.f32 %v139_v14, %v175_v17  ;;  %v273_v23 = vmul.f32 %v115_v20, %v115_v20  ;;  %v272_v25 = vmul.f32 %v114_v22, %v114_v22 }
  0x41   : > { %v284_v9 = vmul.f32 %v186_v47, %v186_v47 }
  0x42   : > { %208 = vrot.lane.b32.xlu1 %v746_v60, %s599_s13  ;;  %v287_v24 = vmul.f32 %v189_v21, %v189_v21 }
  0x43   : > { %206 = vrot.lane.b32.xlu0 %v750_v1, %s599_s13  ;;  %v835_v11 = vadd.f32 %v284_v9, %v270_v4 }
  0x44   : > { %v855_v28 = vadd.f32 %v287_v24, %v273_v23 }
  0x46   : > { %236 = vrot.lane.b32.xlu1 %v746_v60, %s600_s14  ;;  %v168_v60 = vsel %vm161_vm1, %v153_v6, %v160_v0 }
  0x47   : > { %234 = vrot.lane.b32.xlu0 %v750_v1, %s600_s14  ;;  %v188_v1 = vsub.f32 %v146_v19, %v168_v60 }
  0x49   : > { %v286_v26 = vmul.f32 %v188_v1, %v188_v1 }
  0x4a   : > { %212 = vrot.lane.b32.xlu1 %v783_v27, %s599_s13 }
  0x4b   : > { %210 = vrot.lane.b32.xlu0 %v789_v30, %s599_s13  ;;  %v857_v29 = vadd.f32 %v286_v26, %v272_v25 }
  0x4e   : > { %240 = vrot.lane.b32.xlu1 %v783_v27, %s600_s14 }
  0x4f   : > { %238 = vrot.lane.b32.xlu0 %v789_v30, %s600_s14 }
  0x52   : > { %216 = vrot.lane.b32.xlu1 %v97_v52, %s599_s13 }
  0x53   : > { %214 = vrot.lane.b32.xlu0 %v96_v53, %s599_s13 }
  0x56   : > { %244 = vrot.lane.b32.xlu1 %v97_v52, %s600_s14 }
  0x57   : > { %242 = vrot.lane.b32.xlu0 %v96_v53, %s600_s14 }
  0x94   : > { %v195_v2 = vpop.permute.xlu1 %194  ;;  %v191_v32 = vpop.permute.xlu0 %190 }
  0x98   : > { %v197_v33 = vpop.permute.xlu1 %196 }
  0x99   : > { %v193_v8 = vpop.permute.xlu0 %192 }
  0x9c   : > { %v221_v12 = vpop.permute.xlu1 %220 }
  0x9d   : > { %v219_v34 = vpop.permute.xlu0 %218  ;;  %v247_v35 = vsub.f32 %v193_v8, %v221_v12 }
  0x9e   : > { %v246_v37 = vsub.f32 %v191_v32, %v219_v34 }
  0x9f   : > { %v303_v40 = vmul.f32 %v247_v35, %v247_v35 }
  0xa0   : > { %v225_v27 = vpop.permute.xlu1 %224  ;;  %v302_v30 = vmul.f32 %v246_v37, %v246_v37 }
  0xa1   : > { %v223_v39 = vpop.permute.xlu0 %222  ;;  %v249_v41 = vsub.f32 %v197_v33, %v225_v27  ;;  %v317_v52 = vadd.f32 %v303_v40, %v721_v43 }
  0xa2   : > { %v248_v42 = vsub.f32 %v195_v2, %v223_v39  ;;  %v316_v53 = vadd.f32 %v302_v30, %v723_v44 }
  0xa3   : > { %v305_v46 = vmul.f32 %v249_v41, %v249_v41 }
  0xa4   : > { %v304_v48 = vmul.f32 %v248_v42, %v248_v42  ;;  %v201_v49 = vpop.permute.xlu1 %200 }
  0xa5   : > { %v199_v51 = vpop.permute.xlu0 %198  ;;  %v319_v54 = vadd.f32 %v305_v46, %v739_v56 }
  0xa6   : > { %v318_v55 = vadd.f32 %v304_v48, %v748_v61 }
  0xa7   : > { %v336_v57 = vadd.f32 %v319_v54, %v317_v52  ;;  %v101_v52 = vld [vmem:[%s675_s5 + $0x8] sm:$0xff] }
  0xa8   : > { %v330_v58 = vadd.f32 %v318_v55, %v316_v53  ;;  %v229_v59 = vpop.permute.xlu1 %228  ;;  %v100_v53 = vld [vmem:[%s675_s5] sm:$0xff] }
  0xa9   : > { %v227_v38 = vpop.permute.xlu0 %226  ;;  %v251_v62 = vsub.f32 %v201_v49, %v229_v59 }
  0xaa   : > { %v250_v47 = vsub.f32 %v199_v51, %v227_v38 }
  0xab   : > { %v307_v63 = vmul.f32 %v251_v62, %v251_v62 }
  0xac   : > { %v306_v0 = vmul.f32 %v250_v47, %v250_v47  ;;  %v205_v3 = vpop.permute.xlu1 %204 }
  0xad   : > { %v203_v4 = vpop.permute.xlu0 %202  ;;  %v321_v5 = vadd.f32 %v307_v63, %v767_v15 }
  0xae   : > { %v320_v43 = vadd.f32 %v306_v0, %v769_v16 }
  0xaf   : > { %v337_v6 = vadd.f32 %v336_v57, %v321_v5 }
  0xb0   : > { %v331_v44 = vadd.f32 %v330_v58, %v320_v43  ;;  %v233_v7 = vpop.permute.xlu1 %232 }
  0xb1   : > { %v231_v56 = vpop.permute.xlu0 %230  ;;  %v253_v9 = vsub.f32 %v205_v3, %v233_v7 }
  0xb2   : > { %v252_v61 = vsub.f32 %v203_v4, %v231_v56 }
  0xb3   : > { %v309_v13 = vmul.f32 %v253_v9, %v253_v9 }
  0xb4   : > { %v308_v14 = vmul.f32 %v252_v61, %v252_v61  ;;  %v209_v17 = vpop.permute.xlu1 %208 }
  0xb5   : > { %v207_v18 = vpop.permute.xlu0 %206  ;;  %v323_v19 = vadd.f32 %v309_v13, %v791_v31 }
  0xb6   : > { %v322_v20 = vadd.f32 %v308_v14, %v801_v36 }
  0xb7   : > { %v338_v21 = vadd.f32 %v337_v6, %v323_v19 }
  0xb8   : > { %v332_v22 = vadd.f32 %v331_v44, %v322_v20  ;;  %v237_v60 = vpop.permute.xlu1 %236 }
  0xb9   : > { %v235_v15 = vpop.permute.xlu0 %234  ;;  %v255_v1 = vsub.f32 %v209_v17, %v237_v60 }
  0xba   : > { %v254_v16 = vsub.f32 %v207_v18, %v235_v15 }
  0xbb   : > { %v311_v23 = vmul.f32 %v255_v1, %v255_v1 }
  0xbc   : > { %v310_v24 = vmul.f32 %v254_v16, %v254_v16  ;;  %v213_v25 = vpop.permute.xlu1 %212 }
  0xbd   : > { %v211_v26 = vpop.permute.xlu0 %210  ;;  %v325_v2 = vadd.f32 %v311_v23, %v807_v45 }
  0xbe   : > { %v324_v32 = vadd.f32 %v310_v24, %v812_v50 }
  0xbf   : > { %v339_v33 = vadd.f32 %v338_v21, %v325_v2 }
  0xc0   : > { %v333_v31 = vadd.f32 %v332_v22, %v324_v32  ;;  %v241_v8 = vpop.permute.xlu1 %240 }
  0xc1   : > { %v239_v36 = vpop.permute.xlu0 %238  ;;  %v257_v12 = vsub.f32 %v213_v25, %v241_v8 }
  0xc2   : > { %v256_v34 = vsub.f32 %v211_v26, %v239_v36 }
  0xc3   : > { %v313_v35 = vmul.f32 %v257_v12, %v257_v12 }
  0xc4   : > { %v312_v37 = vmul.f32 %v256_v34, %v256_v34  ;;  %v217_v27 = vpop.permute.xlu1 %216 }
  0xc5   : > { %v215_v39 = vpop.permute.xlu0 %214  ;;  %v327_v40 = vadd.f32 %v313_v35, %v833_v10 }
  0xc6   : > { %v326_v30 = vadd.f32 %v312_v37, %v835_v11 }
  0xc7   : > { %v340_v45 = vadd.f32 %v339_v33, %v327_v40 }
  0xc8   : > { %v334_v50 = vadd.f32 %v333_v31, %v326_v30  ;;  %v245_v41 = vpop.permute.xlu1 %244 }
  0xc9   : > { %v243_v42 = vpop.permute.xlu0 %242  ;;  %v259_v46 = vsub.f32 %v217_v27, %v245_v41 }
  0xca   : > { %v258_v48 = vsub.f32 %v215_v39, %v243_v42 }
  0xcb   : > { %v315_v49 = vmul.f32 %v259_v46, %v259_v46 }
  0xcc   : > { %v314_v51 = vmul.f32 %v258_v48, %v258_v48 }
  0xcd   : > { %v329_v10 = vadd.f32 %v315_v49, %v855_v28 }
  0xce   : > { %v328_v11 = vadd.f32 %v314_v51, %v857_v29 }
  0xcf   : > { %v341_v54 = vadd.f32 %v340_v45, %v329_v10 }
  0xd0   : > { %v335_v55 = vadd.f32 %v334_v50, %v328_v11 }
  0xd1   : > { %v343_v57 = vadd.f32 %v341_v54, %v101_v52 }
  0xd2   : > { %v342_v58 = vadd.f32 %v335_v55, %v100_v53 }
  0xd3   : > { %345 = vst [vmem:[%s675_s5 + $0x8] sm:$0xff] %v343_v57 }
  0xd4   : > { %344 = vst [vmem:[%s675_s5] sm:$0xff] %v342_v58 }
  0xd5   : > { %538 = shalt.err (!%p535_p9)
}
  0xd6   : > { %s602_s30 = smov 128   ;;  %s603_s2 = smov 8  }
  0xd7   : > { %450 = dma.vmem_to_hbm [thread:$0]  (%p662_p8), %s363_s22, 256, %s361_s24, %s347_s25, %s602_s30, %s602_s30, %s603_s2  }
  0xd8 PF: > { %p456_p10 = scmp.ge.s32.totalorder %s595_s10, 1  ;;  %s377_s23 = sand.u32 1, %s579_s6  }
  0xd9   : > { %s378_s3 = scalar_lea.sflag [#allocation5], %s377_s23 }
  0xda   : > { %p453_p11 = pnand %p456_p10, %p651_p4 }
  0xdc   : > { %p454_p12 = pneg %p453_p11 }
  0xde   : > { %574 = dma.done.wait (%p454_p12), %s378_s3, 256  }
  0xdf   : > { %576 = vsyncadd (%p454_p12), %s378_s3, 4294967040  ;;  %s14_s10 = sadd.s32 1, %s595_s10   ;;  %s920_s6 = smov %s583_s7 }
  0xe0   : > { %p11_p13 = scmp.ge.s32.totalorder %s14_s10, 13   ;;  %s921_s7 = smov %s660_s19 }
  0xe1   : > { %s922_s8 = smov %s925_s11  ;;  %s923_s9 = smov %s929_s12 }
  0xe2   :  { %13 = sbr.rel (!%p11_p13) target bundleno = 4 (0x4), region = 50 }
  0xe7   :  { %383 = vsyncpa [#allocation5], 1 }
  0xe8   :  { %385 = vsyncpa [#allocation5 + $0x1], 1 }
  0xe9   :  { %386 = vsyncmov [#allocation3] }
  0xec   :  { %s387_s15 = vpop.sfrf %386 }
  0xed   :  { %p448_p4 = scmp.ne.s32.totalorder %s387_s15, 0 }
  0xef   :  { %391 = shalt.err (%p448_p4)  }
  0xf0   :  { %393 = vsyncmov [#allocation3 + $0x1] }
  0xf3   :  { %s394_s20 = vpop.sfrf %393 }
  0xf4   :  { %p449_p8 = scmp.ne.s32.totalorder %s394_s20, 0 }
  0xf6   :  { %398 = shalt.err (%p449_p8)  }

</bundles_post_ra>
